<compile_context>
chip_gen: v7x
topology: tpu7x:2x2x1
jax: 0.10.0
libtpu: 0.0.40
codegen_flags: <defaults>
</compile_context>

<pallas_src>
import functools

import jax
import jax.numpy as jnp
from jax import lax
from jax.experimental import pallas as pl
from jax.experimental.pallas import tpu as pltpu


def _round_up(x, m):
    return (x + m - 1) // m * m


def _default_tile_caps():
    """Generation-aware (tn_max, tv_max).

    Streamed-w2 arithmetic intensity is ~tn FLOP/byte, so tn must clear the
    chip's compute:HBM ratio (v5e ~240, v7x ~310, v6e ~650 FLOP/B).  tv only
    amortizes per-step overhead and sizes the double-buffered w2/out tiles.
    """
    try:
        kind = jax.devices()[0].device_kind.lower()
    except Exception:
        kind = ""
    if "v5 lite" in kind or "v5e" in kind or "v5lite" in kind:
        return 384, 1024      # v5e: 4x128^2 MXU, plenty of (128 MiB) VMEM
    if "v6" in kind:
        return 1024, 1024     # v6e: needs tn >~ 650 for MXU-bound w2 streaming
    if "v7" in kind:
        return 512, 1024      # v7x: 64 MiB physical VMEM, ~310 FLOP/B ratio
    return 512, 1024          # unknown generation: conservative


def _pad2d(a, rows, cols, dtype):
    a = a.astype(dtype)
    if a.shape == (rows, cols):
        return a              # already aligned: no extra HBM copy
    out = jnp.zeros((rows, cols), dtype)
    return out.at[: a.shape[0], : a.shape[1]].set(a)


def prepare_params(params, *, tv_max=None):
    """Pad / cast the weights ONCE (call outside the jitted forward).

    Returns (padded_arrays, meta) where meta carries the static sizes
    (true hidden/vocab dims and the vocab tile tv the weights were padded
    for).  Doing this at init time removes a full read+write pass over w2
    (the largest tensor) from every forward call.
    """
    if tv_max is None:
        tv_max = _default_tile_caps()[1]
    w1, b1, gamma, beta, w2, b2 = params
    D_in, H = w1.shape
    V = w2.shape[1]

    D_pad = _round_up(D_in, 128)
    H_pad = _round_up(H, 128)
    tv = min(tv_max, _round_up(V, 128))
    V_pad = _round_up(V, tv)

    padded = (
        _pad2d(w1, D_pad, H_pad, jnp.bfloat16),
        _pad2d(b1.reshape(1, -1), 1, H_pad, jnp.float32),
        _pad2d(gamma.reshape(1, -1), 1, H_pad, jnp.float32),
        _pad2d(beta.reshape(1, -1), 1, H_pad, jnp.float32),
        # TODO(synk): optional int8 (v5e/v6e) / fp8 (v7x) w2 with per-column
        # scales folded into b2 would halve w2 HBM traffic again.
        _pad2d(w2, H_pad, V_pad, jnp.bfloat16),
        _pad2d(b2.reshape(1, -1), 1, V_pad, jnp.float32),
    )
    meta = dict(num_hiddens=H, vocab_size=V, tv=tv)
    return padded, meta


def _masklm_kernel(x_ref,        # (tn, D_pad)    bf16 gathered masked rows
                   w1_ref,       # (D_pad, H_pad) bf16
                   b1_ref,       # (1, H_pad)     f32
                   gamma_ref,    # (1, H_pad)     f32 (zero padded)
                   beta_ref,     # (1, H_pad)     f32 (zero padded)
                   w2_ref,       # (H_pad, tv)    bf16
                   b2_ref,       # (1, tv)        f32
                   out_ref,      # (tn, tv)       out_dtype
                   h_ref,        # VMEM scratch (tn, H_pad) bf16
                   *, num_hiddens):
    j = pl.program_id(2)   # vocab tile index inside this vocab group

    # Hidden activations depend only on the row tile; compute once per
    # (vocab-group, row-tile) and keep them resident across the inner axis.
    @pl.when(j == 0)
    def _():
        h = jnp.dot(x_ref[...], w1_ref[...],
                    preferred_element_type=jnp.float32) + b1_ref[...]
        h = jnp.maximum(h, 0.0)

        h_pad = h_ref.shape[1]
        inv_h = 1.0 / float(num_hiddens)
        mean = jnp.sum(h, axis=-1, keepdims=True) * inv_h
        d = h - mean
        # Two-pass variance (better conditioned than E[x^2]-E[x]^2).  Padded
        # hidden columns hold exactly 0 (w1/b1 zero padded), so they add
        # (H_pad - H) * mean^2 to sum(d^2); subtract that correction.
        ss = (jnp.sum(d * d, axis=-1, keepdims=True)
              - float(h_pad - num_hiddens) * mean * mean)
        var = ss * inv_h
        hn = d * lax.rsqrt(var + 1e-5)
        # gamma/beta are zero in padded columns -> padded h columns stay 0.
        hn = hn * gamma_ref[...] + beta_ref[...]
        h_ref[...] = hn.astype(h_ref.dtype)

    # Linear(H -> vocab tile) on the MXU (bf16 operands, f32 accumulation).
    out_ref[...] = (jnp.dot(h_ref[...], w2_ref[...],
                            preferred_element_type=jnp.float32)
                    + b2_ref[...]).astype(out_ref.dtype)


def masklm_forward(x, pred_positions, padded_params, *, num_hiddens,
                   vocab_size, tv, tn_max=None, out_dtype=jnp.bfloat16):
    """x: (B, S, D_in) f32, pred_positions: (B, P) int32 -> (B, P, V)."""
    B, S, D_in = x.shape
    P = pred_positions.shape[1]
    N = B * P

    w1_p, b1_p, gamma_p, beta_p, w2_p, b2_p = padded_params
    D_pad, H_pad = w1_p.shape
    V_pad = w2_p.shape[1]

    if tn_max is None:
        tn_max = _default_tile_caps()[0]

    # Row tile: full 256-wide MXU tiles when there are enough rows.  For tiny
    # N the kernel is irreducibly w2-bandwidth-bound -- don't over-provision.
    if N >= 256:
        tn = min(tn_max, _round_up(N, 256))
    else:
        tn = _round_up(max(N, 1), 16)
    N_pad = _round_up(N, tn)

    R = N_pad // tn            # row tiles
    Vt = V_pad // tv           # vocab tiles
    # Megacore fix for small N: with a single row tile, a leading size-2
    # vocab-group axis becomes the parallel one; the cheap Linear1+ReLU+LN is
    # recomputed per group (negligible vs the vocab projection).
    G = 2 if (R == 1 and Vt % 2 == 0) else 1
    Tg = Vt // G
    grid = (G, R, Tg)

    # ---- gather masked rows: bf16 before the take -> single staging copy ----
    batch_idx = jnp.repeat(jnp.arange(B, dtype=jnp.int32), P)
    flat_pos = batch_idx * S + pred_positions.reshape(-1).astype(jnp.int32)
    # TODO(synk): for very large N*D_in, gather in-kernel via scalar-prefetched
    # positions (pl.Element row index_map) to skip this HBM staging copy.
    xg = jnp.take(x.reshape(B * S, D_in).astype(jnp.bfloat16), flat_pos, axis=0)
    xg_p = jnp.pad(xg, ((0, N_pad - N), (0, D_pad - D_in)))

    out_itemsize = jnp.dtype(out_dtype).itemsize

    # ---- explicit VMEM budget (double-buffered streamed tiles + residents) --
    vmem_need = (2 * (tn * D_pad * 2             # x row tile
                      + H_pad * tv * 2           # w2 vocab tile
                      + tv * 4                   # b2 tile
                      + tn * tv * out_itemsize)  # out tile
                 + 2 * (D_pad * H_pad * 2 + 3 * H_pad * 4)  # w1/b1/gamma/beta
                 + tn * H_pad * 2)               # hidden scratch
    cp_kwargs = dict(dimension_semantics=("parallel", "parallel", "arbitrary"))
    if vmem_need > (24 << 20):   # above the common default scoped limit
        try:
            phys = pltpu.get_tpu_info().vmem_capacity_bytes
        except Exception:
            phys = 64 << 20      # v7x-conservative fallback
        cp_kwargs["vmem_limit_bytes"] = int(
            min(vmem_need * 5 // 4 + (2 << 20), phys * 3 // 4))

    # Dominant traffic: w2 streamed once per row tile + logit writeback.
    flops = 2 * N_pad * D_pad * H_pad * G + 2 * N_pad * H_pad * V_pad
    bytes_accessed = (R * w2_p.size * 2
                      + N_pad * V_pad * out_itemsize
                      + xg_p.size * 2 + w1_p.size * 2
                      + (b1_p.size + gamma_p.size + beta_p.size + b2_p.size) * 4)

    kernel = functools.partial(_masklm_kernel, num_hiddens=num_hiddens)

    out = pl.pallas_call(
        kernel,
        out_shape=jax.ShapeDtypeStruct((N_pad, V_pad), out_dtype),
        grid_spec=pltpu.PrefetchScalarGridSpec(
            num_scalar_prefetch=0,
            grid=grid,
            in_specs=[
                pl.BlockSpec((tn, D_pad), lambda g, i, j: (i, 0)),      # x rows
                # Constant index maps -> fetched once, not re-DMA'd per step.
                pl.BlockSpec((D_pad, H_pad), lambda g, i, j: (0, 0)),   # w1
                pl.BlockSpec((1, H_pad), lambda g, i, j: (0, 0)),       # b1
                pl.BlockSpec((1, H_pad), lambda g, i, j: (0, 0)),       # gamma
                pl.BlockSpec((1, H_pad), lambda g, i, j: (0, 0)),       # beta
                pl.BlockSpec((H_pad, tv), lambda g, i, j: (0, g * Tg + j)),  # w2
                pl.BlockSpec((1, tv), lambda g, i, j: (0, g * Tg + j)),      # b2
            ],
            out_specs=pl.BlockSpec((tn, tv), lambda g, i, j: (i, g * Tg + j)),
            scratch_shapes=[pltpu.VMEM((tn, H_pad), jnp.bfloat16)],
        ),
        compiler_params=pltpu.CompilerParams(**cp_kwargs),
        cost_estimate=pl.CostEstimate(
            flops=flops, transcendentals=N_pad * G,
            bytes_accessed=bytes_accessed),
    )(xg_p, w1_p, b1_p, gamma_p, beta_p, w2_p, b2_p)

    return out[:N, :vocab_size].reshape(B, P, vocab_size)


def init_params(key, num_inputs, num_hiddens, vocab_size):
    """Deterministic PyTorch-Linear-style init (uniform +-1/sqrt(fan_in))."""
    k1, k2, k3, k4 = jax.random.split(key, 4)
    lim1 = 1.0 / jnp.sqrt(num_inputs)
    lim2 = 1.0 / jnp.sqrt(num_hiddens)
    w1 = jax.random.uniform(k1, (num_inputs, num_hiddens), jnp.float32, -lim1, lim1)
    b1 = jax.random.uniform(k2, (num_hiddens,), jnp.float32, -lim1, lim1)
    gamma = jnp.ones((num_hiddens,), jnp.float32)
    beta = jnp.zeros((num_hiddens,), jnp.float32)
    w2 = jax.random.uniform(k3, (num_hiddens, vocab_size), jnp.float32, -lim2, lim2)
    b2 = jax.random.uniform(k4, (vocab_size,), jnp.float32, -lim2, lim2)
    return (w1, b1, gamma, beta, w2, b2)


def masklm_reference(x, pred_positions, params):
    """Pure-JAX f32 reference mirroring the PyTorch forward."""
    w1, b1, gamma, beta, w2, b2 = params
    B, S, D = x.shape
    P = pred_positions.shape[1]
    batch_idx = jnp.repeat(jnp.arange(B), P)
    masked = x[batch_idx, pred_positions.reshape(-1)]            # (B*P, D)
    h = jnp.maximum(masked @ w1 + b1, 0.0)
    mean = jnp.mean(h, axis=-1, keepdims=True)
    var = jnp.mean((h - mean) ** 2, axis=-1, keepdims=True)
    h = (h - mean) / jnp.sqrt(var + 1e-5) * gamma + beta
    y = h @ w2 + b2
    return y.reshape(B, P, -1)


if __name__ == "__main__":
    # Small shapes consistent with the module's forward.
    B, S = 2, 8                   # batch, sequence length
    NUM_INPUTS = 256              # encoder hidden size (num_inputs)
    NUM_HIDDENS = 128             # MLP hidden size
    VOCAB = 512                   # vocab_size
    key = jax.random.PRNGKey(0)
    kx, kp = jax.random.split(key)

    x = jax.random.normal(kx, (B, S, NUM_INPUTS), dtype=jnp.float32)
    pred_positions = jnp.array([[1, 5, 2], [6, 1, 5]], dtype=jnp.int32)

    params = init_params(kp, NUM_INPUTS, NUM_HIDDENS, VOCAB)

    # tv_max=256 -> two vocab tiles at V=512: exercises the vocab-streaming
    # path AND the size-2 parallel vocab-group axis (single row tile).
    padded, meta = prepare_params(params, tv_max=256)

    y_ref = masklm_reference(x, pred_positions, params)

    # f32 logits: tight numerical check.
    fwd32 = jax.jit(functools.partial(masklm_forward, **meta,
                                      out_dtype=jnp.float32))
    y32 = jax.block_until_ready(fwd32(x, pred_positions, padded))
    assert y32.shape == (B, pred_positions.shape[1], VOCAB)
    assert jnp.allclose(y32, y_ref, atol=5e-2, rtol=5e-2), float(
        jnp.max(jnp.abs(y32 - y_ref)))

    # bf16 logits: default perf path (halves logit writeback traffic).
    fwd16 = jax.jit(functools.partial(masklm_forward, **meta))
    y16 = jax.block_until_ready(fwd16(x, pred_positions, padded))
    assert y16.dtype == jnp.bfloat16
    assert jnp.allclose(y16.astype(jnp.float32), y_ref, atol=1e-1, rtol=1e-1), \
        float(jnp.max(jnp.abs(y16.astype(jnp.float32) - y_ref)))

    print("KERNEL_OK")
</pallas_src>

<mosaic_0001>
module attributes {stable_mosaic.version = 11 : i64} {
  func.func @_masklm_kernel(%arg0: i32, %arg1: i32, %arg2: i32, %arg3: memref<16x256xbf16, #tpu.memory_space<vmem>>, %arg4: memref<256x128xbf16, #tpu.memory_space<vmem>>, %arg5: memref<1x128xf32, #tpu.memory_space<vmem>>, %arg6: memref<1x128xf32, #tpu.memory_space<vmem>>, %arg7: memref<1x128xf32, #tpu.memory_space<vmem>>, %arg8: memref<128x256xbf16, #tpu.memory_space<vmem>>, %arg9: memref<1x256xf32, #tpu.memory_space<vmem>>, %arg10: memref<16x256xf32, #tpu.memory_space<vmem>>, %arg11: memref<16x128xbf16, #tpu.memory_space<vmem>>) attributes {dimension_semantics = [#tpu.dimension_semantics<parallel>, #tpu.dimension_semantics<parallel>, #tpu.dimension_semantics<arbitrary>], iteration_bounds = array<i64: 2, 1, 1>, scalar_prefetch = 0 : i64, scratch_operands = 1 : i64, tpu.core_type = #tpu.core_type<tc>, window_params = [{transform_indices = @transform_0, window_bounds = array<i64: 16, 256>}, {pipeline_mode = #tpu.pipeline_mode<synchronous>, transform_indices = @transform_1, window_bounds = array<i64: 256, 128>}, {pipeline_mode = #tpu.pipeline_mode<synchronous>, transform_indices = @transform_2, window_bounds = array<i64: 1, 128>}, {pipeline_mode = #tpu.pipeline_mode<synchronous>, transform_indices = @transform_3, window_bounds = array<i64: 1, 128>}, {pipeline_mode = #tpu.pipeline_mode<synchronous>, transform_indices = @transform_4, window_bounds = array<i64: 1, 128>}, {transform_indices = @transform_5, window_bounds = array<i64: 128, 256>}, {transform_indices = @transform_6, window_bounds = array<i64: 1, 256>}, {transform_indices = @transform_7, window_bounds = array<i64: 16, 256>}]} {
    %c0_i32 = arith.constant 0 : i32
    %0 = arith.cmpi eq, %arg2, %c0_i32 : i32
    %1 = arith.extui %0 : i1 to i32
    %c0_i32_0 = arith.constant 0 : i32
    %2 = arith.cmpi ne, %1, %c0_i32_0 : i32
    scf.if %2 {
      %c0_8 = arith.constant 0 : index
      %c0_9 = arith.constant 0 : index
      %10 = vector.load %arg3[%c0_8, %c0_9] : memref<16x256xbf16, #tpu.memory_space<vmem>>, vector<16x256xbf16>
      %c0_10 = arith.constant 0 : index
      %c0_11 = arith.constant 0 : index
      %11 = vector.load %arg4[%c0_10, %c0_11] : memref<256x128xbf16, #tpu.memory_space<vmem>>, vector<256x128xbf16>
      %cst_12 = arith.constant dense<0.000000e+00> : vector<16x128xf32>
      %12 = tpu.matmul %10, %11, %cst_12 {dimension_numbers = #tpu.dot_dimension_numbers<[1], [0], [0], [1], [0, 0, 1, 1], [], []>} : vector<16x256xbf16>, vector<256x128xbf16>, vector<16x128xf32> -> vector<16x128xf32>
      %c0_13 = arith.constant 0 : index
      %c0_14 = arith.constant 0 : index
      %13 = vector.load %arg5[%c0_13, %c0_14] : memref<1x128xf32, #tpu.memory_space<vmem>>, vector<1x128xf32>
      %14 = vector.broadcast %13 : vector<1x128xf32> to vector<16x128xf32>
      %15 = arith.addf %12, %14 : vector<16x128xf32>
      %cst_15 = arith.constant 0.000000e+00 : f32
      %16 = vector.broadcast %cst_15 : f32 to vector<16x128xf32>
      %17 = arith.maximumf %15, %16 : vector<16x128xf32>
      %cst_16 = arith.constant dense<0.000000e+00> : vector<16xf32>
      %18 = vector.multi_reduction <add>, %17, %cst_16 [1] : vector<16x128xf32> to vector<16xf32>
      %19 = vector.shape_cast %18 : vector<16xf32> to vector<16x1xf32>
      %cst_17 = arith.constant 7.812500e-03 : f32
      %20 = vector.broadcast %cst_17 : f32 to vector<16x1xf32>
      %21 = arith.mulf %19, %20 : vector<16x1xf32>
      %22 = vector.broadcast %21 : vector<16x1xf32> to vector<16x128xf32>
      %23 = arith.subf %17, %22 : vector<16x128xf32>
      %24 = arith.mulf %23, %23 : vector<16x128xf32>
      %cst_18 = arith.constant dense<0.000000e+00> : vector<16xf32>
      %25 = vector.multi_reduction <add>, %24, %cst_18 [1] : vector<16x128xf32> to vector<16xf32>
      %26 = vector.shape_cast %25 : vector<16xf32> to vector<16x1xf32>
      %cst_19 = arith.constant 0.000000e+00 : f32
      %27 = vector.broadcast %cst_19 : f32 to vector<16x1xf32>
      %28 = arith.mulf %27, %21 : vector<16x1xf32>
      %29 = arith.mulf %28, %21 : vector<16x1xf32>
      %30 = arith.subf %26, %29 : vector<16x1xf32>
      %cst_20 = arith.constant 7.812500e-03 : f32
      %31 = vector.broadcast %cst_20 : f32 to vector<16x1xf32>
      %32 = arith.mulf %30, %31 : vector<16x1xf32>
      %cst_21 = arith.constant 9.99999974E-6 : f32
      %33 = vector.broadcast %cst_21 : f32 to vector<16x1xf32>
      %34 = arith.addf %32, %33 : vector<16x1xf32>
      %35 = math.rsqrt %34 : vector<16x1xf32>
      %36 = vector.broadcast %35 : vector<16x1xf32> to vector<16x128xf32>
      %37 = arith.mulf %23, %36 : vector<16x128xf32>
      %c0_22 = arith.constant 0 : index
      %c0_23 = arith.constant 0 : index
      %38 = vector.load %arg6[%c0_22, %c0_23] : memref<1x128xf32, #tpu.memory_space<vmem>>, vector<1x128xf32>
      %39 = vector.broadcast %38 : vector<1x128xf32> to vector<16x128xf32>
      %40 = arith.mulf %37, %39 : vector<16x128xf32>
      %c0_24 = arith.constant 0 : index
      %c0_25 = arith.constant 0 : index
      %41 = vector.load %arg7[%c0_24, %c0_25] : memref<1x128xf32, #tpu.memory_space<vmem>>, vector<1x128xf32>
      %42 = vector.broadcast %41 : vector<1x128xf32> to vector<16x128xf32>
      %43 = arith.addf %40, %42 : vector<16x128xf32>
      %44 = arith.truncf %43 : vector<16x128xf32> to vector<16x128xbf16>
      %c0_26 = arith.constant 0 : index
      %c0_27 = arith.constant 0 : index
      %45 = vector.load %arg11[%c0_26, %c0_27] : memref<16x128xbf16, #tpu.memory_space<vmem>>, vector<16x128xbf16>
      tpu.vector_store %arg11[%c0_26, %c0_27], %44 {strides = array<i32>} : memref<16x128xbf16, #tpu.memory_space<vmem>>, vector<16x128xbf16>,
    } else {
    }
    %c0 = arith.constant 0 : index
    %c0_1 = arith.constant 0 : index
    %3 = vector.load %arg11[%c0, %c0_1] : memref<16x128xbf16, #tpu.memory_space<vmem>>, vector<16x128xbf16>
    %c0_2 = arith.constant 0 : index
    %c0_3 = arith.constant 0 : index
    %4 = vector.load %arg8[%c0_2, %c0_3] : memref<128x256xbf16, #tpu.memory_space<vmem>>, vector<128x256xbf16>
    %cst = arith.constant dense<0.000000e+00> : vector<16x256xf32>
    %5 = tpu.matmul %3, %4, %cst {dimension_numbers = #tpu.dot_dimension_numbers<[1], [0], [0], [1], [0, 0, 1, 1], [], []>} : vector<16x128xbf16>, vector<128x256xbf16>, vector<16x256xf32> -> vector<16x256xf32>
    %c0_4 = arith.constant 0 : index
    %c0_5 = arith.constant 0 : index
    %6 = vector.load %arg9[%c0_4, %c0_5] : memref<1x256xf32, #tpu.memory_space<vmem>>, vector<1x256xf32>
    %7 = vector.broadcast %6 : vector<1x256xf32> to vector<16x256xf32>
    %8 = arith.addf %5, %7 : vector<16x256xf32>
    %c0_6 = arith.constant 0 : index
    %c0_7 = arith.constant 0 : index
    %9 = vector.load %arg10[%c0_6, %c0_7] : memref<16x256xf32, #tpu.memory_space<vmem>>, vector<16x256xf32>
    tpu.vector_store %arg10[%c0_6, %c0_7], %8 {strides = array<i32>} : memref<16x256xf32, #tpu.memory_space<vmem>>, vector<16x256xf32>,
    return
  }
  func.func @transform_0(%arg0: i32, %arg1: i32, %arg2: i32) -> (i32, i32) {
    %c0_i32 = arith.constant 0 : i32
    %c0_i32_0 = arith.constant 0 : i32
    return %arg1, %c0_i32 : i32, i32
  }
  func.func @transform_1(%arg0: i32, %arg1: i32, %arg2: i32) -> (i32, i32) {
    %c0_i32 = arith.constant 0 : i32
    %c0_i32_0 = arith.constant 0 : i32
    %c0_i32_1 = arith.constant 0 : i32
    return %c0_i32, %c0_i32_0 : i32, i32
  }
  func.func @transform_2(%arg0: i32, %arg1: i32, %arg2: i32) -> (i32, i32) {
    %c0_i32 = arith.constant 0 : i32
    %c0_i32_0 = arith.constant 0 : i32
    %c0_i32_1 = arith.constant 0 : i32
    return %c0_i32, %c0_i32_0 : i32, i32
  }
  func.func @transform_3(%arg0: i32, %arg1: i32, %arg2: i32) -> (i32, i32) {
    %c0_i32 = arith.constant 0 : i32
    %c0_i32_0 = arith.constant 0 : i32
    %c0_i32_1 = arith.constant 0 : i32
    return %c0_i32, %c0_i32_0 : i32, i32
  }
  func.func @transform_4(%arg0: i32, %arg1: i32, %arg2: i32) -> (i32, i32) {
    %c0_i32 = arith.constant 0 : i32
    %c0_i32_0 = arith.constant 0 : i32
    %c0_i32_1 = arith.constant 0 : i32
    return %c0_i32, %c0_i32_0 : i32, i32
  }
  func.func @transform_5(%arg0: i32, %arg1: i32, %arg2: i32) -> (i32, i32) {
    %c1_i32 = arith.constant 1 : i32
    %0 = arith.muli %arg0, %c1_i32 : i32
    %1 = arith.addi %0, %arg2 : i32
    %c0_i32 = arith.constant 0 : i32
    %c0_i32_0 = arith.constant 0 : i32
    return %c0_i32, %1 : i32, i32
  }
  func.func @transform_6(%arg0: i32, %arg1: i32, %arg2: i32) -> (i32, i32) {
    %c1_i32 = arith.constant 1 : i32
    %0 = arith.muli %arg0, %c1_i32 : i32
    %1 = arith.addi %0, %arg2 : i32
    %c0_i32 = arith.constant 0 : i32
    %c0_i32_0 = arith.constant 0 : i32
    return %c0_i32, %1 : i32, i32
  }
  func.func @transform_7(%arg0: i32, %arg1: i32, %arg2: i32) -> (i32, i32) {
    %c1_i32 = arith.constant 1 : i32
    %0 = arith.muli %arg0, %c1_i32 : i32
    %1 = arith.addi %0, %arg2 : i32
    %c0_i32 = arith.constant 0 : i32
    return %arg1, %1 : i32, i32
  }
}

</mosaic_0001>

<bundles_post_ra>
// kernel: masklm_forward.1
= control target key start
LH: loop header
LB: loop body
LE: loop exit
PB: predicated region body
PF: predicated region fallthrough
CT: control target
= control target key end

     0   :  { %12 = vsyncpa [#allocation4], 0  ;;  %s1445_s0 = inlined_call_operand.vmem [shape: bf16[16,256], index: 0, kind: input, shape index: {}]   ;;  %s1446_s1 = inlined_call_operand.vmem [shape: bf16[256,128], index: 1, kind: input, shape index: {}]   ;;  %s1447_s2 = inlined_call_operand.vmem [shape: f32[1,128], index: 2, kind: input, shape index: {}]   ;;  %s1448_s3 = inlined_call_operand.vmem [shape: f32[1,128], index: 3, kind: input, shape index: {}]   ;;  %s1449_s4 = inlined_call_operand.vmem [shape: f32[1,128], index: 4, kind: input, shape index: {}]   ;;  %s1450_s5 = inlined_call_operand.hbm [shape: bf16[128,512], index: 5, kind: input, shape index: {}]   ;;  %s1451_s6 = inlined_call_operand.vmem [shape: f32[1,512], index: 6, kind: input, shape index: {}]   ;;  %s1452_s7 = inlined_call_operand.vmem [shape: f32[16,512], index: 7, kind: output, shape index: {}]  }
   0x1   :  { %14 = vsyncpa [#allocation4 + $0x1], 0  ;;  %s1224_s24 = smov 0   ;;  %s1226_s25 = smov 0  }
   0x2   :  { %s1228_s26 = smov 0   ;;  %s1230_s27 = smov 0  }
   0x3   :  { %s1232_s28 = smov 0   ;;  %s1234_s29 = smov 0  }
   0x4 LB: > { %s913_s30 = sadd.s32 4294967295, %s1177_s29   ;;  %s39_s8 = sadd.s32 1, %s1173_s28  ;;  %s1177_s29 = sphi %s1234_s29, %s20_s29   ;;  %s1173_s28 = sphi %s1232_s28, %s1463_s28   ;;  %s1169_s27 = sphi %s1230_s27, %s1462_s27   ;;  %s1165_s26 = sphi %s1228_s26, %s1461_s26   ;;  %s1161_s25 = sphi %s1226_s25, %s1460_s25   ;;  %s1157_s24 = sphi %s1224_s24, %s1459_s24  }
   0x5   : > { %p41_p0 = scmp.ge.s32.totalorder %s39_s8, 2  ;;  %s158_s9 = sadd.s32 1, %s1165_s26 }
   0x6   : > { %p165_p1 = scmp.ne.s32.totalorder %s1165_s26, %s1161_s25  ;;  %p166_p2 = scmp.eq.s32.totalorder %s1177_s29, 0 }
   0x7   : > { %s1465_s8 = smov (%p41_p0, %s39_s8), 0  ;;  %p171_p4 = scmp.ne.s32.totalorder %s1161_s25, %s1157_s24 }
   0x8   : > { %p1260_p3 = por %p166_p2, %p165_p1  ;;  %s155_s11 = ssub.s32 %s1173_s28, %s1465_s8 }
   0x9   : > { %p172_p5 = scmp.eq.s32.totalorder %s913_s30, 0  ;;  %p156_p6 = scmp.eq.s32.totalorder %s155_s11, 0 }
   0xa   : > { %p227_p7 = scmp.eq.s32.totalorder %s913_s30, 1  ;;  %p997_p10 = scmp.lt.s32.totalorder %s1177_s29, 2 }
   0xb   : > { %p1267_p8 = por %p172_p5, %p171_p4  ;;  %s275_s15 = sand.u32 1, %s1165_s26  }
   0xc   : > { %s1272_s13 = scalar_select %p156_p6, %s1165_s26, %s158_s9  }
   0xd   : > { %p1274_p9 = por %p227_p7, %p165_p1  ;;  %s967_s16 = sshll.u32 %s1173_s28, 7 }
   0xe   : > { %s918_s17 = sshll.u32 %s275_s15, 7  ;;  %s1284_s20 = scalar_lea.hbm %s1450_s5, %s967_s16 }
   0xf   : > { %s1455_s14 = scalar_select %p1274_p9, 1, 0 }
  0x10   : > { %s279_s21 = scalar_lea.vmem [#allocation3], %s918_s17  ;;  %p1288_p11 = pnand %p997_p10, %p1260_p3 }
  0x11   : > { %s287_s22 = sshll.u32 %s279_s21, 4  ;;  %s1295_s24 = scalar_lea.sflag [#allocation4], %s275_s15  ;;  %s1292_s22 = int_to_ptr.vmem [resolvable:$true] %s287_s22 }
  0x12   : > { %s1097_s30 = scalar_lea.hbm %s1284_s20, 2048  ;;  %p1099_p0 = pneg %p1288_p11 }
  0x13   : > { %p1098_p13 = scmp.ne.s32.totalorder %s1284_s20, %s1097_s30  ;;  %s1102_s11 = scalar_lea.hbm %s1450_s5, 4096 }
  0x14   : > { %p1103_p3 = scmp.lt.u32.totalorder %s1284_s20, %s1450_s5  ;;  %p1104_p4 = scmp.lt.u32.totalorder %s1102_s11, %s1097_s30 }
  0x15   : > { %p1100_p1 = pnand %p1099_p0, %p1098_p13  ;;  %p1106_p6 = scmp.lt.u32.totalorder %s1097_s30, %s1284_s20 }
  0x16   : > { %p1105_p5 = por %p1104_p4, %p1103_p3 }
  0x17   : > { %p1101_p2 = pneg %p1100_p1 }
  0x18   : > { %p1107_p7 = por %p1106_p6, %p1105_p5 }
  0x1a   : > { %p1108_p10 = pnand %p1107_p7, %p1101_p2 }
  0x1c   : > { %1111 = shalt.err (!%p1108_p10)
}
  0x1d   : > { %s1112_s15 = scalar_lea.vmem %s1292_s22, 2048  ;;  %s1179_s18 = smov [#allocation3]  }
  0x1e   : > { %p1113_p13 = scmp.ne.s32.totalorder %s1292_s22, %s1112_s15  ;;  %s1117_s19 = sshll.u32 %s1179_s18, 4  ;;  %s1118_s19 = int_to_ptr.vmem [resolvable:$false] %s1117_s19 }
  0x1f   : > { %s1119_s21 = scalar_lea.vmem %s1118_s19, 4096  ;;  %p1120_p9 = scmp.lt.s32.totalorder %s1292_s22, %s1118_s19 }
  0x20   : > { %p1115_p1 = pnand %p1113_p13, %p1099_p0  ;;  %p1121_p3 = scmp.lt.s32.totalorder %s1119_s21, %s1112_s15 }
  0x22   : > { %p1116_p12 = pneg %p1115_p1  ;;  %p1122_p4 = por %p1121_p3, %p1120_p9 }
  0x24   : > { %p1123_p5 = pnand %p1122_p4, %p1116_p12 }
  0x26   : > { %1126 = shalt.err (!%p1123_p5)
}
  0x27   : > { %s1180_s30 = smov 256   ;;  %s1181_s9 = smov 128  }
  0x28   : > { %s1182_s10 = smov 8   ;;  %p305_p0 = scmp.lt.s32.totalorder %s1177_s29, 3 }
  0x29   : > { %996 = dma.hbm_to_vmem [thread:$0]  (!%p1288_p11), %s1284_s20, 2048, %s1292_s22, %s1295_s24, %s1180_s30, %s1181_s9, %s1182_s10  }
  0x2a   : > { %p1457_p2 = scmp.ge.s32.totalorder %s1177_s29, 1 }
  0x2c   : > { %p306_p6 = pnand %p1457_p2, %p305_p0 }
  0x2d   : > { %s1327_s11 = sand.u32 (!%p306_p6), 1, %s1161_s25  }
  0x2e   : > { %309 = sbr.rel (%p306_p6) target bundleno = 851 (0x353), region = 48  ;;  %s922_s16 = sshll.u32 (!%p306_p6), %s1327_s11, 7 }
  0x2f   : > { %s312_s17 = scalar_lea.sflag (!%p306_p6), [#allocation4], %s1327_s11  ;;  %s1331_s15 = scalar_lea.vmem (!%p306_p6), [#allocation3], %s922_s16 }
  0x35   : > { %1152 = dma.done.wait (%p1267_p8), %s312_s17, 2048  }
  0x36   : > { %1154 = vsyncadd (%p1267_p8), %s312_s17, 4294965248  ;;  %v1050_v0 = vld [vmem:[%s1446_s1 + $0x40] sm:$0xff]   ;;  %v1052_v2 = vld [vmem:[%s1446_s1 + $0x48] sm:$0xff]   ;;  %v1183_v48 = vmov 0   ;;  %s924_s23 = sshll.u32 %s1169_s27, 1  ;;  %s923_s21 = sshll.u32 %s1327_s11, 5 }
  0x37   : > { %v1051_v1 = vld [vmem:[%s1446_s1] sm:$0xff]   ;;  %969 = vmatprep.subr.bf16.mxu0 %v1050_v0  ;;  %v1053_v3 = vld [vmem:[%s1446_s1 + $0x8] sm:$0xff]   ;;  %v1054_v4 = vld [vmem:[%s1446_s1 + $0x50] sm:$0xff]   ;;  %759 = vmatprep.mubr.bf16.mxu1 %v1183_v48  ;;  %p367_p8 = scmp.lt.s32.totalorder %s924_s23, 3  ;;  %s355_s30 = scalar_lea.vmem [#allocation5], %s923_s21 }
  0x38   : > { %970 = vmatpush3.bf16.msra.mxu0 %v1051_v1  ;;  %v1055_v5 = vld [vmem:[%s1446_s1 + $0x10] sm:$0xff]   ;;  %v1056_v6 = vld [vmem:[%s1446_s1 + $0x58] sm:$0xff]   ;;  %v1058_v8 = vld [vmem:[%s1446_s1 + $0x60] sm:$0xff]   ;;  %p1458_p9 = scmp.ne.s32.totalorder %s1455_s14, 0 }
  0x39   : > { %971 = vmatprep.subr.bf16.mxu0 %v1052_v2  ;;  %v1057_v7 = vld [vmem:[%s1446_s1 + $0x18] sm:$0xff]   ;;  %v1059_v9 = vld [vmem:[%s1446_s1 + $0x20] sm:$0xff]   ;;  %v1060_v10 = vld [vmem:[%s1446_s1 + $0x68] sm:$0xff]   ;;  %s1467_s23 = smov (!%p367_p8, %s924_s23), 3  ;;  %s968_s11 = sshll.u32 (%p1458_p9), %s1169_s27, 4 }
  0x3a   : > { %v1061_v11 = vld [vmem:[%s1446_s1 + $0x28] sm:$0xff]   ;;  %v1062_v13 = vld [vmem:[%s1446_s1 + $0x70] sm:$0xff]   ;;  %v1064_v15 = vld [vmem:[%s1446_s1 + $0x78] sm:$0xff]   ;;  %s369_s19 = scalar_lea.vmem %s1451_s6, %s1467_s23  ;;  %s787_s10 = scalar_lea.vmem (%p1458_p9), %s1452_s7, %s968_s11 }
  0x3b   : > { %v1068_v12 = vld [vmem:[%s1445_s0 + $0x4] ss:$8 sps:$4 sm:$0xff]   ;;  %v1063_v14 = vld [vmem:[%s1446_s1 + $0x30] sm:$0xff]   ;;  %v1065_v16 = vld [vmem:[%s1446_s1 + $0x38] sm:$0xff]  }
  0x3c   : > { %972 = vmatpush3.bf16.msra.mxu0 %v1053_v3  ;;  %559 = vmatprep.mubr.bf16.mxu0 %v1068_v12  ;;  %v1066_v17 = vld [vmem:[%s1445_s0] ss:$8 sps:$4 sm:$0xff]   ;;  %v1069_v29 = vld [vmem:[%s1331_s15 + $0x4] ss:$8 sps:$4 sm:$0xff]   ;;  %v1072_v39 = vld [vmem:[%s1331_s15 + $0x14] ss:$8 sps:$4 sm:$0xff]  }
  0x3d   : > { %973 = vmatprep.subr.bf16.mxu0 %v1054_v4  ;;  %v925_v20 = vld [vmem:[%s1447_s2] ss:$0 sm:$0xff]  ;;  %727 = vmatprep.subr.bf16.mxu1 %v1069_v29  ;;  %v1074_v40 = vld [vmem:[%s1331_s15 + $0x10] ss:$8 sps:$4 sm:$0xff]   ;;  %v1075_v41 = vld [vmem:[%s1331_s15 + $0x24] ss:$8 sps:$4 sm:$0xff]  }
  0x3e   : > { %v1071_v30 = vld [vmem:[%s1331_s15] ss:$8 sps:$4 sm:$0xff]   ;;  %v1078_v43 = vld [vmem:[%s1331_s15 + $0x34] ss:$8 sps:$4 sm:$0xff]   ;;  %v1080_v44 = vld [vmem:[%s1331_s15 + $0x30] ss:$8 sps:$4 sm:$0xff]  }
  0x3f   : > { %728 = vmatpush1.bf16.msra.mxu1 %v1071_v30  ;;  %v1077_v42 = vld [vmem:[%s1331_s15 + $0x20] ss:$8 sps:$4 sm:$0xff]   ;;  %v1081_v45 = vld [vmem:[%s1331_s15 + $0x44] ss:$8 sps:$4 sm:$0xff]   ;;  %v1084_v47 = vld [vmem:[%s1331_s15 + $0x54] ss:$8 sps:$4 sm:$0xff]  }
  0x40   : > { %974 = vmatpush3.bf16.msra.mxu0 %v1055_v5  ;;  %729 = vmatprep.subr.bf16.mxu1 %v1072_v39  ;;  %v1083_v46 = vld [vmem:[%s1331_s15 + $0x40] ss:$8 sps:$4 sm:$0xff]   ;;  %v1086_v49 = vld [vmem:[%s1331_s15 + $0x50] ss:$8 sps:$4 sm:$0xff]   ;;  %v1087_v50 = vld [vmem:[%s1331_s15 + $0x64] ss:$8 sps:$4 sm:$0xff]  }
  0x41   : > { %975 = vmatprep.subr.bf16.mxu0 %v1056_v6  ;;  %v1089_v51 = vld [vmem:[%s1331_s15 + $0x60] ss:$8 sps:$4 sm:$0xff]   ;;  %v1090_v52 = vld [vmem:[%s1331_s15 + $0x74] ss:$8 sps:$4 sm:$0xff]   ;;  %v1092_v53 = vld [vmem:[%s1331_s15 + $0x70] ss:$8 sps:$4 sm:$0xff]  }
  0x42   : > { %v944_v4 = vld [vmem:[%s1448_s3] ss:$0 sm:$0xff] }
  0x43   : > { %730 = vmatpush1.bf16.msra.mxu1 %v1074_v40 }
  0x44   : > { %976 = vmatpush3.bf16.msra.mxu0 %v1057_v7  ;;  %731 = vmatprep.subr.bf16.mxu1 %v1075_v41 }
  0x45   : > { %977 = vmatprep.subr.bf16.mxu0 %v1058_v8  ;;  %v945_v8 = vld [vmem:[%s1449_s4] ss:$0 sm:$0xff] }
  0x47   : > { %732 = vmatpush1.bf16.msra.mxu1 %v1077_v42 }
  0x48   : > { %978 = vmatpush3.bf16.msra.mxu0 %v1059_v9  ;;  %733 = vmatprep.subr.bf16.mxu1 %v1078_v43 }
  0x49   : > { %979 = vmatprep.subr.bf16.mxu0 %v1060_v10 }
  0x4b   : > { %734 = vmatpush1.bf16.msra.mxu1 %v1080_v44 }
  0x4c   : > { %980 = vmatpush3.bf16.msra.mxu0 %v1061_v11  ;;  %735 = vmatprep.subr.bf16.mxu1 %v1081_v45 }
  0x4d   : > { %981 = vmatprep.subr.bf16.mxu0 %v1062_v13  ;;  %v637_v13 = vlaneseq }
  0x4f   : > { %736 = vmatpush1.bf16.msra.mxu1 %v1083_v46 }
  0x50   : > { %982 = vmatpush3.bf16.msra.mxu0 %v1063_v14  ;;  %737 = vmatprep.subr.bf16.mxu1 %v1084_v47  ;;  %v638_v14 = vshrl.u32 %v637_v13, 7 }
  0x51   : > { %983 = vmatprep.subr.bf16.mxu0 %v1064_v15 }
  0x52   : > { %v639_v15 = vsub.s32 0, %v638_v14 }
  0x53   : > { %738 = vmatpush1.bf16.msra.mxu1 %v1086_v49 }
  0x54   : > { %984 = vmatpush3.bf16.msra.mxu0 %v1065_v16  ;;  %739 = vmatprep.subr.bf16.mxu1 %v1087_v50  ;;  %v635_v16 = vld [vmem:[%s369_s19] sm:$0x3] }
  0x57   : > { %560 = vmatmul.mubr.bf16.vlgmr.msra.gmra.mrb[0].mxu0 %v1066_v17  ;;  %740 = vmatpush1.bf16.msra.mxu1 %v1089_v51  ;;  %v643_v17 = vsub.s32 1, %v638_v14 }
  0x58   : > { %741 = vmatprep.subr.bf16.mxu1 %v1090_v52 }
  0x5b   : > { %742 = vmatpush1.bf16.msra.mxu1 %v1092_v53 }
 0x12a   : > { %v985_v18 = vpop.f32.mrb[0].mxu0 }
 0x12b   : > { %v986_v19 = vpop.f32.mrb[1].mxu0 }
 0x12c   : > { %v987_v21 = vadd.f32 %v986_v19, %v985_v18  ;;  %v988_v22 = vpop.f32.mrb[2].mxu0  ;;  %v640_v18 = vrot.slane %v635_v16, %v639_v15  ;;  %v644_v19 = vrot.slane %v635_v16, %v643_v17 }
 0x12d   : > { %v989_v23 = vpop.f32.mrb[3].mxu0 }
 0x12e   : > { %v990_v24 = vadd.f32 %v989_v23, %v988_v22  ;;  %v562_v25 = vadd.f32 %v987_v21, %v925_v20 }
 0x130   : > { %v568_v26 = vmax.f32 %v562_v25, 0.0  ;;  %v565_v27 = vadd.f32 %v990_v24, %v925_v20 }
 0x132   : > { %570 = vadd.xlane.f32.xlu0 %v568_v26  ;;  %v569_v28 = vmax.f32 %v565_v27, 0.0 }
 0x136   : > { %572 = vadd.xlane.f32.xlu0 %v569_v28 }
 0x1bf   : > { %v571_v31 = vpop.xlane.xlu0 %570 }
 0x1c0   : > { %v574_v32 = vmul.f32 0.0078125, %v571_v31 }
 0x1c2   : > { %v576_v33 = vsub.f32 %v568_v26, %v574_v32  ;;  %v584_v54 = vmul.f32 0.0, %v574_v32 }
 0x1c3   : > { %v573_v34 = vpop.xlane.xlu0 %572 }
 0x1c4   : > { %v575_v35 = vmul.f32 0.0078125, %v573_v34  ;;  %v578_v36 = vmul.f32 %v576_v33, %v576_v33  ;;  %v586_v56 = vmul.f32 %v584_v54, %v574_v32 }
 0x1c6   : > { %580 = vadd.xlane.f32.xlu1 %v578_v36  ;;  %v577_v37 = vsub.f32 %v569_v28, %v575_v35  ;;  %v585_v55 = vmul.f32 0.0, %v575_v35 }
 0x1c8   : > { %v579_v38 = vmul.f32 %v577_v37, %v577_v37  ;;  %v587_v60 = vmul.f32 %v585_v55, %v575_v35 }
 0x1ca   : > { %582 = vadd.xlane.f32.xlu1 %v579_v38 }
 0x253   : > { %v581_v57 = vpop.xlane.xlu1 %580 }
 0x254   : > { %v588_v58 = vsub.f32 %v581_v57, %v586_v56 }
 0x256   : > { %v590_v59 = vmul.f32 0.0078125, %v588_v58 }
 0x257   : > { %v583_v61 = vpop.xlane.xlu1 %582 }
 0x258   : > { %v592_v62 = vadd.f32 1e-05, %v590_v59  ;;  %v589_v63 = vsub.f32 %v583_v61, %v587_v60 }
 0x25a   : > { %1093 = vrsqrt.f32 %v592_v62  ;;  %v591_v0 = vmul.f32 0.0078125, %v589_v63 }
 0x25c   : > { %v593_v1 = vadd.f32 1e-05, %v591_v0 }
 0x25e   : > { %1095 = vrsqrt.f32 %v593_v1 }
 0x264   : > { %v1094_v2 = vpop.eup %1093 }
 0x265   : > { %v596_v3 = vmul.f32 %v1094_v2, %v576_v33 }
 0x267   : > { %v605_v7 = vmul.f32 %v944_v4, %v596_v3 }
 0x268   : > { %v1096_v5 = vpop.eup %1095 }
 0x269   : > { %v597_v6 = vmul.f32 %v1096_v5, %v577_v37  ;;  %v614_v10 = vadd.f32 %v945_v8, %v605_v7 }
 0x26b   : > { %v606_v9 = vmul.f32 %v944_v4, %v597_v6 }
 0x26d   : > { %v615_v11 = vadd.f32 %v945_v8, %v606_v9 }
 0x26f   : > { %v616_v12 = vpack.c.bf16 %v615_v11, %v614_v10 }
 0x271   : > { %760 = vmatmul.mubr.bf16.vlgmr.msra.gmra.mrb[0].mxu1 %v616_v12 }
 0x344   : > { %v761_v20 = vpop.f32.mrb[0].mxu1  ;;  %780 = sbr.rel (!%p1458_p9) target bundleno = 851 (0x353), region = 60 }
 0x345   : > { %v762_v21 = vadd.f32 %v761_v20, %v640_v18  ;;  %v763_v22 = vpop.f32.mrb[1].mxu1 }
 0x346   : > { %v764_v23 = vadd.f32 %v763_v22, %v644_v19  ;;  %v765_v24 = vpop.f32.mrb[2].mxu1 }
 0x347   : > { %770 = vst [vmem:[%s355_s30] sm:$0xff] %v762_v21  ;;  %v766_v25 = vadd.f32 %v765_v24, %v640_v18  ;;  %v767_v26 = vpop.f32.mrb[3].mxu1 }
 0x348   : > { %771 = vst [vmem:[%s355_s30 + $0x8] sm:$0xff] %v764_v23  ;;  %v768_v27 = vadd.f32 %v767_v26, %v644_v19 }
 0x349   : > { %772 = vst [vmem:[%s355_s30 + $0x10] sm:$0xff] %v766_v25 }
 0x34a   : > { %773 = vst [vmem:[%s355_s30 + $0x18] sm:$0xff] %v768_v27 }
 0x34e   : > { %v800_v28 = vld [vmem:[%s355_s30] sm:$0xff] }
 0x34f   : > { %v802_v29 = vld [vmem:[%s355_s30 + $0x8] sm:$0xff]  ;;  %801 = vst [vmem:[%s787_s10] sm:$0xff] %v800_v28 }
 0x350   : > { %v804_v30 = vld [vmem:[%s355_s30 + $0x10] sm:$0xff]  ;;  %803 = vst [vmem:[%s787_s10 + $0x8] sm:$0xff] %v802_v29 }
 0x351   : > { %v806_v31 = vld [vmem:[%s355_s30 + $0x18] sm:$0xff]  ;;  %805 = vst [vmem:[%s787_s10 + $0x20] sm:$0xff] %v804_v30 }
 0x352   : > { %807 = vst [vmem:[%s787_s10 + $0x28] sm:$0xff] %v806_v31 }
 0x353 PF: > { %s20_s29 = sadd.s32 1, %s1177_s29   ;;  %s1459_s24 = smov %s1161_s25 }
 0x354   : > { %p17_p11 = scmp.ge.s32.totalorder %s20_s29, 4   ;;  %s1460_s25 = smov %s1165_s26 }
 0x355   : > { %s1461_s26 = smov %s1272_s13  ;;  %s1462_s27 = smov %s1173_s28 }
 0x356   : > { %s1463_s28 = smov %s1465_s8  ;;  %19 = sbr.rel (!%p17_p11) target bundleno = 4 (0x4), region = 121 }
 0x35d   :  { %823 = vsyncpa [#allocation4], 1 }
 0x35e   :  { %825 = vsyncpa [#allocation4 + $0x1], 1 }

</bundles_post_ra>
